<compile_context>
chip_gen: v6e
topology: v6e:2x2x1
jax: 0.10.0
libtpu: 0.0.40
codegen_flags: <defaults>
</compile_context>

<pallas_src>
import functools

import jax
import jax.numpy as jnp
from jax.experimental import pallas as pl
from jax.experimental.pallas import tpu as pltpu


def _kl_div_kernel(teacher_ref, student_ref, targets_ref, w1_ref, w2_ref,
                   out_ref,
                   m_s_ref, l_s_ref, tgt_ref, m_t_ref, z_t_ref, a_t_ref,
                   l_ss_ref,
                   *, temperature, num_classes, c_tiles, mask_c):
    one_t = (temperature == 1.0)                    # trace-time python bool
    inv_t = jnp.float32(1.0 / temperature)
    t_sq = jnp.float32(temperature * temperature)

    ci = pl.program_id(1)

    # ---- init accumulators at the first C tile of every row tile ------------
    @pl.when(ci == 0)
    def _init():
        m_s_ref[...] = jnp.full_like(m_s_ref, -jnp.inf)
        m_t_ref[...] = jnp.full_like(m_t_ref, -jnp.inf)
        l_s_ref[...] = jnp.zeros_like(l_s_ref)
        z_t_ref[...] = jnp.zeros_like(z_t_ref)
        a_t_ref[...] = jnp.zeros_like(a_t_ref)
        tgt_ref[...] = jnp.zeros_like(tgt_ref)
        l_ss_ref[...] = jnp.zeros_like(l_ss_ref)

    # Cast in-kernel so bf16-in-HBM inputs still compute in f32.
    s = student_ref[...].astype(jnp.float32)        # [TN, TC]
    t = teacher_ref[...].astype(jnp.float32)        # [TN, TC]
    tn, tc = s.shape

    col = jax.lax.broadcasted_iota(jnp.int32, (tn, tc), 1)
    if c_tiles > 1:
        col = col + ci * tc
    if mask_c:
        # Partial last C tile: mask padded columns so exp() underflows to 0.
        valid = col < num_classes
        neg = jnp.float32(-1e30)
        s = jnp.where(valid, s, neg)
        t = jnp.where(valid, t, neg)

    # ---- target logit (the target class lies in exactly one C tile) ---------
    tg = targets_ref[...]                           # [TN, 1] int32
    tgt_ref[...] += jnp.sum(jnp.where(col == tg, s, 0.0), axis=-1, keepdims=True)

    # ---- student: online logsumexp of raw logits (CE term) ------------------
    m_s_old = m_s_ref[...]
    m_s_new = jnp.maximum(m_s_old, jnp.max(s, axis=-1, keepdims=True))
    e_s = jnp.exp(s - m_s_new)
    l_s_ref[...] = (l_s_ref[...] * jnp.exp(m_s_old - m_s_new)
                    + jnp.sum(e_s, axis=-1, keepdims=True))
    m_s_ref[...] = m_s_new

    # ---- teacher: online softmax stats of t/T, accumulating sum p_t*(s/T) ---
    if one_t:
        ts, ss = t, s
    else:
        ts, ss = t * inv_t, s * inv_t
    m_t_old = m_t_ref[...]
    m_t_new = jnp.maximum(m_t_old, jnp.max(ts, axis=-1, keepdims=True))
    e_t = jnp.exp(ts - m_t_new)
    scale_t = jnp.exp(m_t_old - m_t_new)
    z_t_ref[...] = z_t_ref[...] * scale_t + jnp.sum(e_t, axis=-1, keepdims=True)
    a_t_ref[...] = a_t_ref[...] * scale_t + jnp.sum(e_t * ss, axis=-1,
                                                    keepdims=True)
    m_t_ref[...] = m_t_new

    # ---- student: online logsumexp of s/T (KD term); m_ss = m_s / T ---------
    if not one_t:
        e_ss = jnp.exp(ss - m_s_new * inv_t)
        l_ss_ref[...] = (l_ss_ref[...] * jnp.exp((m_s_old - m_s_new) * inv_t)
                         + jnp.sum(e_ss, axis=-1, keepdims=True))

    # ---- finalize on the last C tile -----------------------------------------
    @pl.when(ci == c_tiles - 1)
    def _finalize():
        w1 = w1_ref[...].astype(jnp.float32)
        w2 = w2_ref[...].astype(jnp.float32)
        m_s_f = m_s_ref[...]
        lse_s = m_s_f + jnp.log(l_s_ref[...])
        ce = lse_s - tgt_ref[...]
        # sum p_t * log_softmax(ss) = sum p_t * ss - lse_ss   (since sum p_t = 1)
        mean_ss = a_t_ref[...] * pl.reciprocal(z_t_ref[...], approx=False)
        if one_t:
            lse_ss = lse_s
        else:
            lse_ss = m_s_f * inv_t + jnp.log(l_ss_ref[...])
        kd = (lse_ss - mean_ss) * t_sq
        out_ref[...] = w1 * ce + w2 * kd


def _round_up(x, m):
    return ((x + m - 1) // m) * m


def _vmem_limit_bytes():
    """Chip-aware scoped-VMEM limit (v5e/v6e: 128 MiB phys; v7x: 64 MiB)."""
    phys = 64 * 1024 * 1024                 # conservative fallback (v7x)
    try:
        info = pltpu.get_tpu_info()
        phys = int(getattr(info, "vmem_capacity_bytes", phys)) or phys
    except Exception:
        pass
    return min(int(phys * 3 // 4), 100 * 1024 * 1024)


def _select_tiles(n, c, in_itemsize, budget_bytes):
    """VMEM-aware (rows, cols) tile selection.

    Per-element cost: teacher+student pipeline buffers (2 arrays x 2 buffers)
    plus ~10 f32-sized full-tile temporaries live inside the kernel.
    Per-row cost: (TN,1) scratch / small blocks padded to 128 lanes.
    """
    per_elem = 2 * 2 * in_itemsize + 10 * 4
    per_row_extra = 16 * 128 * 4

    def best_tn(tc):
        tn = budget_bytes // (tc * per_elem + per_row_extra)
        tn = min(int(tn), 1024, _round_up(n, 8))
        return max(8, (tn // 8) * 8)

    tc = c
    if c > 2048 and best_tn(c) < 64:
        # Vocab-scale C: tile the class axis (online logsumexp/softmax pass).
        tc = 2048                           # multiple of 128
    return best_tn(tc), tc


def kl_divergence(teacher_logit, student_logit, targets, weights1, weights2,
                  n_test, temperature=1.0, tile_rows=None, tile_cols=None):
    n, c = student_logit.shape
    assert n_test == n and teacher_logit.shape == (n, c)

    vmem_limit = _vmem_limit_bytes()
    itemsize = max(jnp.dtype(teacher_logit.dtype).itemsize,
                   jnp.dtype(student_logit.dtype).itemsize)
    tn, tc = _select_tiles(n, c, itemsize, int(vmem_limit * 0.85))
    if tile_rows is not None:
        tn = tile_rows
    if tile_cols is not None:
        tc = tile_cols

    n_grid = (n + tn - 1) // tn             # partial last row block: writes dropped
    c_grid = (c + tc - 1) // tc
    mask_c = (c % tc) != 0

    targets2 = targets.astype(jnp.int32).reshape(n, 1)
    w1 = weights1.astype(jnp.float32).reshape(n, 1)
    w2 = weights2.astype(jnp.float32).reshape(n, 1)

    kernel = functools.partial(_kl_div_kernel,
                               temperature=float(temperature),
                               num_classes=c, c_tiles=c_grid, mask_c=mask_c)

    t_item = jnp.dtype(teacher_logit.dtype).itemsize
    s_item = jnp.dtype(student_logit.dtype).itemsize
    n_exp = 2 if float(temperature) == 1.0 else 3
    cost = pl.CostEstimate(
        flops=int((8 + 2 * n_exp) * n * c),
        transcendentals=int(n_exp * n * c + 8 * n),
        bytes_accessed=int(n * c * (t_item + s_item) + 4 * n * 4 + n * 4),
    )

    # TODO(synk): if a profile shows exposed DMA on v5e/v6e, deepen the two
    # logits pipelines with pipeline_mode=pl.Buffered(3) (skip on v7x, where
    # VMEM is the constraint); also prefer shipping bf16 logits from upstream.
    out = pl.pallas_call(
        kernel,
        out_shape=jax.ShapeDtypeStruct((n, 1), jnp.float32),
        grid=(n_grid, c_grid),
        in_specs=[
            pl.BlockSpec((tn, tc), lambda i, ci: (i, ci)),   # teacher logits
            pl.BlockSpec((tn, tc), lambda i, ci: (i, ci)),   # student logits
            pl.BlockSpec((tn, 1), lambda i, ci: (i, 0)),     # targets (int32)
            pl.BlockSpec((tn, 1), lambda i, ci: (i, 0)),     # weights1
            pl.BlockSpec((tn, 1), lambda i, ci: (i, 0)),     # weights2
        ],
        out_specs=pl.BlockSpec((tn, 1), lambda i, ci: (i, 0)),
        scratch_shapes=[pltpu.VMEM((tn, 1), jnp.float32) for _ in range(7)],
        compiler_params=pltpu.CompilerParams(
            dimension_semantics=("parallel", "arbitrary"),
            vmem_limit_bytes=vmem_limit),
        cost_estimate=cost,
    )(teacher_logit, student_logit, targets2, w1, w2)

    return out[:, 0]                                        # [N]


def _reference(teacher, student, targets, w1, w2, T):
    # Pure-JAX reference of the PyTorch per-sample loop.
    student = student.astype(jnp.float32)
    teacher = teacher.astype(jnp.float32)
    lse = jax.scipy.special.logsumexp(student, axis=-1)
    tgt = jnp.take_along_axis(student, targets[:, None], axis=-1)[:, 0]
    ce = lse - tgt
    p_t = jax.nn.softmax(teacher / T, axis=-1)
    log_p_s = jax.nn.log_softmax(student / T, axis=-1)
    kd = -jnp.sum(p_t * log_p_s, axis=-1) * T * T
    return w1 * ce + w2 * kd


if __name__ == "__main__":
    key = jax.random.PRNGKey(0)
    N, C = 8, 32
    k1, k2, k3, k4, k5 = jax.random.split(key, 5)
    teacher = jax.random.normal(k1, (N, C), dtype=jnp.float32) * 2.0
    student = jax.random.normal(k2, (N, C), dtype=jnp.float32) * 2.0
    targets = jax.random.randint(k3, (N,), 0, C)
    weights1 = jax.random.uniform(k4, (N,), dtype=jnp.float32)
    weights2 = jax.random.uniform(k5, (N,), dtype=jnp.float32)

    # 1) general temperature path (single C tile).
    loss = kl_divergence(teacher, student, targets, weights1, weights2, N,
                         temperature=2.0)
    jax.block_until_ready(loss)
    ref = _reference(teacher, student, targets, weights1, weights2, 2.0)
    assert loss.shape == (N,)
    assert jnp.allclose(loss, ref, rtol=2e-5, atol=2e-5)

    # 2) temperature == 1 specialized path.
    loss1 = kl_divergence(teacher, student, targets, weights1, weights2, N,
                          temperature=1.0)
    jax.block_until_ready(loss1)
    ref1 = _reference(teacher, student, targets, weights1, weights2, 1.0)
    assert jnp.allclose(loss1, ref1, rtol=2e-5, atol=2e-5)

    # 3) online multi-C-tile path with a masked partial last class tile.
    N2, C2 = 16, 200
    j1, j2, j3, j4, j5 = jax.random.split(jax.random.PRNGKey(1), 5)
    teacher2 = jax.random.normal(j1, (N2, C2), dtype=jnp.float32)
    student2 = jax.random.normal(j2, (N2, C2), dtype=jnp.float32)
    targets2 = jax.random.randint(j3, (N2,), 0, C2)
    w1b = jax.random.uniform(j4, (N2,), dtype=jnp.float32)
    w2b = jax.random.uniform(j5, (N2,), dtype=jnp.float32)
    loss2 = kl_divergence(teacher2, student2, targets2, w1b, w2b, N2,
                          temperature=3.0, tile_rows=8, tile_cols=128)
    jax.block_until_ready(loss2)
    ref2 = _reference(teacher2, student2, targets2, w1b, w2b, 3.0)
    assert jnp.allclose(loss2, ref2, rtol=2e-5, atol=2e-5)

    print("KERNEL_OK")
</pallas_src>

<mosaic_0001>
module attributes {stable_mosaic.version = 11 : i64} {
  func.func @_kl_div_kernel(%arg0: i32, %arg1: i32, %arg2: memref<8x32xf32, #tpu.memory_space<vmem>>, %arg3: memref<8x32xf32, #tpu.memory_space<vmem>>, %arg4: memref<8x1xi32, #tpu.memory_space<vmem>>, %arg5: memref<8x1xf32, #tpu.memory_space<vmem>>, %arg6: memref<8x1xf32, #tpu.memory_space<vmem>>, %arg7: memref<8x1xf32, #tpu.memory_space<vmem>>, %arg8: memref<8x1xf32, #tpu.memory_space<vmem>>, %arg9: memref<8x1xf32, #tpu.memory_space<vmem>>, %arg10: memref<8x1xf32, #tpu.memory_space<vmem>>, %arg11: memref<8x1xf32, #tpu.memory_space<vmem>>, %arg12: memref<8x1xf32, #tpu.memory_space<vmem>>, %arg13: memref<8x1xf32, #tpu.memory_space<vmem>>, %arg14: memref<8x1xf32, #tpu.memory_space<vmem>>) attributes {dimension_semantics = [#tpu.dimension_semantics<parallel>, #tpu.dimension_semantics<arbitrary>], iteration_bounds = array<i64: 1, 1>, scalar_prefetch = 0 : i64, scratch_operands = 7 : i64, tpu.core_type = #tpu.core_type<tc>, window_params = [{transform_indices = @transform_0, window_bounds = array<i64: 8, 32>}, {transform_indices = @transform_1, window_bounds = array<i64: 8, 32>}, {transform_indices = @transform_2, window_bounds = array<i64: 8, 1>}, {transform_indices = @transform_3, window_bounds = array<i64: 8, 1>}, {transform_indices = @transform_4, window_bounds = array<i64: 8, 1>}, {transform_indices = @transform_5, window_bounds = array<i64: 8, 1>}]} {
    %c0_i32 = arith.constant 0 : i32
    %0 = arith.cmpi eq, %arg1, %c0_i32 : i32
    %1 = arith.extui %0 : i1 to i32
    %c0_i32_0 = arith.constant 0 : i32
    %2 = arith.cmpi ne, %1, %c0_i32_0 : i32
    scf.if %2 {
      %cst_49 = arith.constant 0xFF800000 : f32
      %77 = vector.broadcast %cst_49 : f32 to vector<8x1xf32>
      %c0_50 = arith.constant 0 : index
      %c0_51 = arith.constant 0 : index
      %78 = vector.load %arg8[%c0_50, %c0_51] : memref<8x1xf32, #tpu.memory_space<vmem>>, vector<8x1xf32>
      tpu.vector_store %arg8[%c0_50, %c0_51], %77 {strides = array<i32>} : memref<8x1xf32, #tpu.memory_space<vmem>>, vector<8x1xf32>,
      %cst_52 = arith.constant 0xFF800000 : f32
      %79 = vector.broadcast %cst_52 : f32 to vector<8x1xf32>
      %c0_53 = arith.constant 0 : index
      %c0_54 = arith.constant 0 : index
      %80 = vector.load %arg11[%c0_53, %c0_54] : memref<8x1xf32, #tpu.memory_space<vmem>>, vector<8x1xf32>
      tpu.vector_store %arg11[%c0_53, %c0_54], %79 {strides = array<i32>} : memref<8x1xf32, #tpu.memory_space<vmem>>, vector<8x1xf32>,
      %cst_55 = arith.constant 0.000000e+00 : f32
      %81 = vector.broadcast %cst_55 : f32 to vector<8x1xf32>
      %c0_56 = arith.constant 0 : index
      %c0_57 = arith.constant 0 : index
      %82 = vector.load %arg9[%c0_56, %c0_57] : memref<8x1xf32, #tpu.memory_space<vmem>>, vector<8x1xf32>
      tpu.vector_store %arg9[%c0_56, %c0_57], %81 {strides = array<i32>} : memref<8x1xf32, #tpu.memory_space<vmem>>, vector<8x1xf32>,
      %cst_58 = arith.constant 0.000000e+00 : f32
      %83 = vector.broadcast %cst_58 : f32 to vector<8x1xf32>
      %c0_59 = arith.constant 0 : index
      %c0_60 = arith.constant 0 : index
      %84 = vector.load %arg12[%c0_59, %c0_60] : memref<8x1xf32, #tpu.memory_space<vmem>>, vector<8x1xf32>
      tpu.vector_store %arg12[%c0_59, %c0_60], %83 {strides = array<i32>} : memref<8x1xf32, #tpu.memory_space<vmem>>, vector<8x1xf32>,
      %cst_61 = arith.constant 0.000000e+00 : f32
      %85 = vector.broadcast %cst_61 : f32 to vector<8x1xf32>
      %c0_62 = arith.constant 0 : index
      %c0_63 = arith.constant 0 : index
      %86 = vector.load %arg13[%c0_62, %c0_63] : memref<8x1xf32, #tpu.memory_space<vmem>>, vector<8x1xf32>
      tpu.vector_store %arg13[%c0_62, %c0_63], %85 {strides = array<i32>} : memref<8x1xf32, #tpu.memory_space<vmem>>, vector<8x1xf32>,
      %cst_64 = arith.constant 0.000000e+00 : f32
      %87 = vector.broadcast %cst_64 : f32 to vector<8x1xf32>
      %c0_65 = arith.constant 0 : index
      %c0_66 = arith.constant 0 : index
      %88 = vector.load %arg10[%c0_65, %c0_66] : memref<8x1xf32, #tpu.memory_space<vmem>>, vector<8x1xf32>
      tpu.vector_store %arg10[%c0_65, %c0_66], %87 {strides = array<i32>} : memref<8x1xf32, #tpu.memory_space<vmem>>, vector<8x1xf32>,
      %cst_67 = arith.constant 0.000000e+00 : f32
      %89 = vector.broadcast %cst_67 : f32 to vector<8x1xf32>
      %c0_68 = arith.constant 0 : index
      %c0_69 = arith.constant 0 : index
      %90 = vector.load %arg14[%c0_68, %c0_69] : memref<8x1xf32, #tpu.memory_space<vmem>>, vector<8x1xf32>
      tpu.vector_store %arg14[%c0_68, %c0_69], %89 {strides = array<i32>} : memref<8x1xf32, #tpu.memory_space<vmem>>, vector<8x1xf32>,
    } else {
    }
    %c0 = arith.constant 0 : index
    %c0_1 = arith.constant 0 : index
    %3 = vector.load %arg3[%c0, %c0_1] : memref<8x32xf32, #tpu.memory_space<vmem>>, vector<8x32xf32>
    %c0_2 = arith.constant 0 : index
    %c0_3 = arith.constant 0 : index
    %4 = vector.load %arg2[%c0_2, %c0_3] : memref<8x32xf32, #tpu.memory_space<vmem>>, vector<8x32xf32>
    %5 = tpu.iota {dimensions = array<i32: 1>} : vector<8x32xi32>
    %c0_4 = arith.constant 0 : index
    %c0_5 = arith.constant 0 : index
    %6 = vector.load %arg4[%c0_4, %c0_5] : memref<8x1xi32, #tpu.memory_space<vmem>>, vector<8x1xi32>
    %c0_6 = arith.constant 0 : index
    %c0_7 = arith.constant 0 : index
    %7 = vector.load %arg10[%c0_6, %c0_7] : memref<8x1xf32, #tpu.memory_space<vmem>>, vector<8x1xf32>
    %8 = vector.broadcast %6 : vector<8x1xi32> to vector<8x32xi32>
    %9 = arith.cmpi eq, %5, %8 : vector<8x32xi32>
    %cst = arith.constant 0.000000e+00 : f32
    %10 = vector.broadcast %cst : f32 to vector<8x32xf32>
    %11 = arith.select %9, %3, %10 : vector<8x32xi1>, vector<8x32xf32>
    %cst_8 = arith.constant dense<0.000000e+00> : vector<8xf32>
    %12 = vector.multi_reduction <add>, %11, %cst_8 [1] : vector<8x32xf32> to vector<8xf32>
    %13 = vector.shape_cast %12 : vector<8xf32> to vector<8x1xf32>
    %14 = arith.addf %7, %13 : vector<8x1xf32>
    %c0_9 = arith.constant 0 : index
    %c0_10 = arith.constant 0 : index
    %15 = vector.load %arg10[%c0_9, %c0_10] : memref<8x1xf32, #tpu.memory_space<vmem>>, vector<8x1xf32>
    tpu.vector_store %arg10[%c0_9, %c0_10], %14 {strides = array<i32>} : memref<8x1xf32, #tpu.memory_space<vmem>>, vector<8x1xf32>,
    %c0_11 = arith.constant 0 : index
    %c0_12 = arith.constant 0 : index
    %16 = vector.load %arg8[%c0_11, %c0_12] : memref<8x1xf32, #tpu.memory_space<vmem>>, vector<8x1xf32>
    %cst_13 = arith.constant dense<0xFF800000> : vector<8xf32>
    %17 = vector.multi_reduction <maximumf>, %3, %cst_13 [1] : vector<8x32xf32> to vector<8xf32>
    %18 = vector.shape_cast %17 : vector<8xf32> to vector<8x1xf32>
    %19 = arith.maximumf %16, %18 : vector<8x1xf32>
    %20 = vector.broadcast %19 : vector<8x1xf32> to vector<8x32xf32>
    %21 = arith.subf %3, %20 : vector<8x32xf32>
    %22 = math.exp %21 : vector<8x32xf32>
    %c0_14 = arith.constant 0 : index
    %c0_15 = arith.constant 0 : index
    %23 = vector.load %arg9[%c0_14, %c0_15] : memref<8x1xf32, #tpu.memory_space<vmem>>, vector<8x1xf32>
    %24 = arith.subf %16, %19 : vector<8x1xf32>
    %25 = math.exp %24 : vector<8x1xf32>
    %26 = arith.mulf %23, %25 : vector<8x1xf32>
    %cst_16 = arith.constant dense<0.000000e+00> : vector<8xf32>
    %27 = vector.multi_reduction <add>, %22, %cst_16 [1] : vector<8x32xf32> to vector<8xf32>
    %28 = vector.shape_cast %27 : vector<8xf32> to vector<8x1xf32>
    %29 = arith.addf %26, %28 : vector<8x1xf32>
    %c0_17 = arith.constant 0 : index
    %c0_18 = arith.constant 0 : index
    %30 = vector.load %arg9[%c0_17, %c0_18] : memref<8x1xf32, #tpu.memory_space<vmem>>, vector<8x1xf32>
    tpu.vector_store %arg9[%c0_17, %c0_18], %29 {strides = array<i32>} : memref<8x1xf32, #tpu.memory_space<vmem>>, vector<8x1xf32>,
    %c0_19 = arith.constant 0 : index
    %c0_20 = arith.constant 0 : index
    %31 = vector.load %arg8[%c0_19, %c0_20] : memref<8x1xf32, #tpu.memory_space<vmem>>, vector<8x1xf32>
    tpu.vector_store %arg8[%c0_19, %c0_20], %19 {strides = array<i32>} : memref<8x1xf32, #tpu.memory_space<vmem>>, vector<8x1xf32>,
    %cst_21 = arith.constant 5.000000e-01 : f32
    %32 = vector.broadcast %cst_21 : f32 to vector<8x32xf32>
    %33 = arith.mulf %4, %32 : vector<8x32xf32>
    %cst_22 = arith.constant 5.000000e-01 : f32
    %34 = vector.broadcast %cst_22 : f32 to vector<8x32xf32>
    %35 = arith.mulf %3, %34 : vector<8x32xf32>
    %c0_23 = arith.constant 0 : index
    %c0_24 = arith.constant 0 : index
    %36 = vector.load %arg11[%c0_23, %c0_24] : memref<8x1xf32, #tpu.memory_space<vmem>>, vector<8x1xf32>
    %cst_25 = arith.constant dense<0xFF800000> : vector<8xf32>
    %37 = vector.multi_reduction <maximumf>, %33, %cst_25 [1] : vector<8x32xf32> to vector<8xf32>
    %38 = vector.shape_cast %37 : vector<8xf32> to vector<8x1xf32>
    %39 = arith.maximumf %36, %38 : vector<8x1xf32>
    %40 = vector.broadcast %39 : vector<8x1xf32> to vector<8x32xf32>
    %41 = arith.subf %33, %40 : vector<8x32xf32>
    %42 = math.exp %41 : vector<8x32xf32>
    %43 = arith.subf %36, %39 : vector<8x1xf32>
    %44 = math.exp %43 : vector<8x1xf32>
    %c0_26 = arith.constant 0 : index
    %c0_27 = arith.constant 0 : index
    %45 = vector.load %arg12[%c0_26, %c0_27] : memref<8x1xf32, #tpu.memory_space<vmem>>, vector<8x1xf32>
    %46 = arith.mulf %45, %44 : vector<8x1xf32>
    %cst_28 = arith.constant dense<0.000000e+00> : vector<8xf32>
    %47 = vector.multi_reduction <add>, %42, %cst_28 [1] : vector<8x32xf32> to vector<8xf32>
    %48 = vector.shape_cast %47 : vector<8xf32> to vector<8x1xf32>
    %49 = arith.addf %46, %48 : vector<8x1xf32>
    %c0_29 = arith.constant 0 : index
    %c0_30 = arith.constant 0 : index
    %50 = vector.load %arg12[%c0_29, %c0_30] : memref<8x1xf32, #tpu.memory_space<vmem>>, vector<8x1xf32>
    tpu.vector_store %arg12[%c0_29, %c0_30], %49 {strides = array<i32>} : memref<8x1xf32, #tpu.memory_space<vmem>>, vector<8x1xf32>,
    %c0_31 = arith.constant 0 : index
    %c0_32 = arith.constant 0 : index
    %51 = vector.load %arg13[%c0_31, %c0_32] : memref<8x1xf32, #tpu.memory_space<vmem>>, vector<8x1xf32>
    %52 = arith.mulf %51, %44 : vector<8x1xf32>
    %53 = arith.mulf %42, %35 : vector<8x32xf32>
    %cst_33 = arith.constant dense<0.000000e+00> : vector<8xf32>
    %54 = vector.multi_reduction <add>, %53, %cst_33 [1] : vector<8x32xf32> to vector<8xf32>
    %55 = vector.shape_cast %54 : vector<8xf32> to vector<8x1xf32>
    %56 = arith.addf %52, %55 : vector<8x1xf32>
    %c0_34 = arith.constant 0 : index
    %c0_35 = arith.constant 0 : index
    %57 = vector.load %arg13[%c0_34, %c0_35] : memref<8x1xf32, #tpu.memory_space<vmem>>, vector<8x1xf32>
    tpu.vector_store %arg13[%c0_34, %c0_35], %56 {strides = array<i32>} : memref<8x1xf32, #tpu.memory_space<vmem>>, vector<8x1xf32>,
    %c0_36 = arith.constant 0 : index
    %c0_37 = arith.constant 0 : index
    %58 = vector.load %arg11[%c0_36, %c0_37] : memref<8x1xf32, #tpu.memory_space<vmem>>, vector<8x1xf32>
    tpu.vector_store %arg11[%c0_36, %c0_37], %39 {strides = array<i32>} : memref<8x1xf32, #tpu.memory_space<vmem>>, vector<8x1xf32>,
    %cst_38 = arith.constant 5.000000e-01 : f32
    %59 = vector.broadcast %cst_38 : f32 to vector<8x1xf32>
    %60 = arith.mulf %19, %59 : vector<8x1xf32>
    %61 = vector.broadcast %60 : vector<8x1xf32> to vector<8x32xf32>
    %62 = arith.subf %35, %61 : vector<8x32xf32>
    %63 = math.exp %62 : vector<8x32xf32>
    %c0_39 = arith.constant 0 : index
    %c0_40 = arith.constant 0 : index
    %64 = vector.load %arg14[%c0_39, %c0_40] : memref<8x1xf32, #tpu.memory_space<vmem>>, vector<8x1xf32>
    %65 = arith.subf %16, %19 : vector<8x1xf32>
    %cst_41 = arith.constant 5.000000e-01 : f32
    %66 = vector.broadcast %cst_41 : f32 to vector<8x1xf32>
    %67 = arith.mulf %65, %66 : vector<8x1xf32>
    %68 = math.exp %67 : vector<8x1xf32>
    %69 = arith.mulf %64, %68 : vector<8x1xf32>
    %cst_42 = arith.constant dense<0.000000e+00> : vector<8xf32>
    %70 = vector.multi_reduction <add>, %63, %cst_42 [1] : vector<8x32xf32> to vector<8xf32>
    %71 = vector.shape_cast %70 : vector<8xf32> to vector<8x1xf32>
    %72 = arith.addf %69, %71 : vector<8x1xf32>
    %c0_43 = arith.constant 0 : index
    %c0_44 = arith.constant 0 : index
    %73 = vector.load %arg14[%c0_43, %c0_44] : memref<8x1xf32, #tpu.memory_space<vmem>>, vector<8x1xf32>
    tpu.vector_store %arg14[%c0_43, %c0_44], %72 {strides = array<i32>} : memref<8x1xf32, #tpu.memory_space<vmem>>, vector<8x1xf32>,
    %c0_i32_45 = arith.constant 0 : i32
    %74 = arith.cmpi eq, %arg1, %c0_i32_45 : i32
    %75 = arith.extui %74 : i1 to i32
    %cst_46 = arith.constant 5.000000e-01 : f32
    %cst_47 = arith.constant 4.000000e+00 : f32
    %c0_i32_48 = arith.constant 0 : i32
    %76 = arith.cmpi ne, %75, %c0_i32_48 : i32
    scf.if %76 {
      %c0_49 = arith.constant 0 : index
      %c0_50 = arith.constant 0 : index
      %77 = vector.load %arg5[%c0_49, %c0_50] : memref<8x1xf32, #tpu.memory_space<vmem>>, vector<8x1xf32>
      %c0_51 = arith.constant 0 : index
      %c0_52 = arith.constant 0 : index
      %78 = vector.load %arg6[%c0_51, %c0_52] : memref<8x1xf32, #tpu.memory_space<vmem>>, vector<8x1xf32>
      %c0_53 = arith.constant 0 : index
      %c0_54 = arith.constant 0 : index
      %79 = vector.load %arg8[%c0_53, %c0_54] : memref<8x1xf32, #tpu.memory_space<vmem>>, vector<8x1xf32>
      %c0_55 = arith.constant 0 : index
      %c0_56 = arith.constant 0 : index
      %80 = vector.load %arg9[%c0_55, %c0_56] : memref<8x1xf32, #tpu.memory_space<vmem>>, vector<8x1xf32>
      %81 = math.log %80 : vector<8x1xf32>
      %82 = arith.addf %79, %81 : vector<8x1xf32>
      %c0_57 = arith.constant 0 : index
      %c0_58 = arith.constant 0 : index
      %83 = vector.load %arg10[%c0_57, %c0_58] : memref<8x1xf32, #tpu.memory_space<vmem>>, vector<8x1xf32>
      %84 = arith.subf %82, %83 : vector<8x1xf32>
      %c0_59 = arith.constant 0 : index
      %c0_60 = arith.constant 0 : index
      %85 = vector.load %arg13[%c0_59, %c0_60] : memref<8x1xf32, #tpu.memory_space<vmem>>, vector<8x1xf32>
      %c0_61 = arith.constant 0 : index
      %c0_62 = arith.constant 0 : index
      %86 = vector.load %arg12[%c0_61, %c0_62] : memref<8x1xf32, #tpu.memory_space<vmem>>, vector<8x1xf32>
      %87 = tpu.reciprocal %86 : vector<8x1xf32> -> vector<8x1xf32>
      %88 = arith.mulf %85, %87 : vector<8x1xf32>
      %89 = vector.broadcast %cst_46 : f32 to vector<8x1xf32>
      %90 = arith.mulf %79, %89 : vector<8x1xf32>
      %c0_63 = arith.constant 0 : index
      %c0_64 = arith.constant 0 : index
      %91 = vector.load %arg14[%c0_63, %c0_64] : memref<8x1xf32, #tpu.memory_space<vmem>>, vector<8x1xf32>
      %92 = math.log %91 : vector<8x1xf32>
      %93 = arith.addf %90, %92 : vector<8x1xf32>
      %94 = arith.subf %93, %88 : vector<8x1xf32>
      %95 = vector.broadcast %cst_47 : f32 to vector<8x1xf32>
      %96 = arith.mulf %94, %95 : vector<8x1xf32>
      %97 = arith.mulf %77, %84 : vector<8x1xf32>
      %98 = arith.mulf %78, %96 : vector<8x1xf32>
      %99 = arith.addf %97, %98 : vector<8x1xf32>
      %c0_65 = arith.constant 0 : index
      %c0_66 = arith.constant 0 : index
      %100 = vector.load %arg7[%c0_65, %c0_66] : memref<8x1xf32, #tpu.memory_space<vmem>>, vector<8x1xf32>
      tpu.vector_store %arg7[%c0_65, %c0_66], %99 {strides = array<i32>} : memref<8x1xf32, #tpu.memory_space<vmem>>, vector<8x1xf32>,
    } else {
    }
    return
  }
  func.func @transform_0(%arg0: i32, %arg1: i32) -> (i32, i32) {
    %c0_i32 = arith.constant 0 : i32
    return %arg0, %arg1 : i32, i32
  }
  func.func @transform_1(%arg0: i32, %arg1: i32) -> (i32, i32) {
    %c0_i32 = arith.constant 0 : i32
    return %arg0, %arg1 : i32, i32
  }
  func.func @transform_2(%arg0: i32, %arg1: i32) -> (i32, i32) {
    %c0_i32 = arith.constant 0 : i32
    %c0_i32_0 = arith.constant 0 : i32
    return %arg0, %c0_i32 : i32, i32
  }
  func.func @transform_3(%arg0: i32, %arg1: i32) -> (i32, i32) {
    %c0_i32 = arith.constant 0 : i32
    %c0_i32_0 = arith.constant 0 : i32
    return %arg0, %c0_i32 : i32, i32
  }
  func.func @transform_4(%arg0: i32, %arg1: i32) -> (i32, i32) {
    %c0_i32 = arith.constant 0 : i32
    %c0_i32_0 = arith.constant 0 : i32
    return %arg0, %c0_i32 : i32, i32
  }
  func.func @transform_5(%arg0: i32, %arg1: i32) -> (i32, i32) {
    %c0_i32 = arith.constant 0 : i32
    %c0_i32_0 = arith.constant 0 : i32
    return %arg0, %c0_i32 : i32, i32
  }
}

</mosaic_0001>

<bundles_post_ra>
// kernel: tpu_custom_call.1
= control target key start
LH: loop header
LB: loop body
LE: loop exit
PB: predicated region body
PF: predicated region fallthrough
CT: control target
= control target key end

     0   :  { %vm43_vm0 = vcmask 261120   ;;  %vm24_vm1 = vcmask 7168   ;;  %v181_v2 = vmov -inf   ;;  %v182_v6 = vmov 0   ;;  %s260_s1 = inlined_call_operand.vmem [shape: f32[8,32], index: 1, kind: input, shape index: {}]   ;;  %s261_s0 = inlined_call_operand.vmem [shape: f32[8,32], index: 0, kind: input, shape index: {}]   ;;  %s262_s2 = inlined_call_operand.vmem [shape: s32[8,1], index: 2, kind: input, shape index: {}]   ;;  %s263_s3 = inlined_call_operand.vmem [shape: f32[8,1], index: 3, kind: input, shape index: {}]   ;;  %s264_s4 = inlined_call_operand.vmem [shape: f32[8,1], index: 4, kind: input, shape index: {}]   ;;  %s265_s5 = inlined_call_operand.vmem [shape: f32[8,1], index: 5, kind: output, shape index: {}]  }
   0x1   :  { %v217_v0 = vld [vmem:[%s260_s1] sm:$0xff]  ;;  %25 = vst.msk [vmem:[#allocation2] sm:$0xff] %vm24_vm1, %v181_v2  ;;  %26 = vst.msk [vmem:[#allocation5] sm:$0xff] %vm24_vm1, %v181_v2  ;;  %161 = vset.pattern.permute.xlu1 %v182_v6  ;;  %162 = vset.pattern.permute.xlu0 %v182_v6  ;;  %v183_v7 = vmov 0.0   ;;  %v34_v28 = vlaneseq }
   0x2   :  { %v33_v1 = vld [vmem:[%s261_s0] sm:$0xff]  ;;  %v51_v3 = vsel %vm43_vm0, %v217_v0, -inf  ;;  %31 = vst.msk [vmem:[#allocation8] sm:$0xff] %vm24_vm1, %v183_v7  ;;  %27 = vst.msk [vmem:[#allocation3] sm:$0xff] %vm24_vm1, %v183_v7  ;;  %v75_v18 = vmul.f32 0.5, %v217_v0 }
   0x3   :  { %v74_v4 = vmul.f32 0.5, %v33_v1  ;;  %52 = vmax.xlane.f32.xlu0 %v51_v3  ;;  %28 = vst.msk [vmem:[#allocation6] sm:$0xff] %vm24_vm1, %v183_v7  ;;  %29 = vst.msk [vmem:[#allocation7] sm:$0xff] %vm24_vm1, %v183_v7  ;;  %v36_v17 = vld [vmem:[%s262_s2] sm:$0xff]  ;;  %v35_v32 = vand.u32 127, %v34_v28 }
   0x4   :  { %30 = vst.msk [vmem:[#allocation4] sm:$0xff] %vm24_vm1, %v183_v7 }
   0x5   :  { %v77_v5 = vsel %vm43_vm0, %v74_v4, -inf }
   0x7   :  { %78 = vmax.xlane.f32.xlu0 %v77_v5 }
   0x8   :  { %v50_v8 = vld [vmem:[#allocation2] sm:$0xff]  ;;  %v76_v11 = vld [vmem:[#allocation5] sm:$0xff] }
   0x9   :  { %v117_v46 = vld [vmem:[#allocation8] sm:$0xff]  ;;  %v63_v52 = vld [vmem:[#allocation3] sm:$0xff] }
   0xa   :  { %v92_v48 = vld [vmem:[#allocation6] sm:$0xff]  ;;  %v99_v59 = vld [vmem:[#allocation7] sm:$0xff] }
   0xb   :  { %v37_v1 = vld [vmem:[#allocation4] sm:$0xff] }
  0x8c   :  { %v53_v9 = vpop.xlane.xlu0 %52 }
  0x8d   :  { %v54_v10 = vmax.f32 %v50_v8, %v53_v9 }
  0x8f   :  { %v64_v12 = vsub.f32 %v50_v8, %v54_v10  ;;  %73 = vst.msk [vmem:[#allocation2] sm:$0xff] %vm24_vm1, %v54_v10  ;;  %v108_v13 = vmul.f32 0.5, %v54_v10 }
  0x90   :  { %v79_v14 = vpop.xlane.xlu0 %78 }
  0x91   :  { %v80_v15 = vmax.f32 %v76_v11, %v79_v14  ;;  %111 = vperm.xlu1 %161, %v108_v13   ;;  %v118_v41 = vmul.f32 0.5, %v64_v12  ;;  %v65_v44 = vmul.f32 1.442695, %v64_v12 }
  0x93   :  { %v89_v16 = vsub.f32 %v76_v11, %v80_v15  ;;  %107 = vst.msk [vmem:[#allocation5] sm:$0xff] %vm24_vm1, %v80_v15  ;;  %83 = vperm.xlu0 %162, %v80_v15   ;;  %v119_v42 = vmul.f32 1.442695, %v118_v41 }
  0x95   :  { %57 = vperm.xlu1 %161, %v54_v10   ;;  %v90_v43 = vmul.f32 1.442695, %v89_v16 }
  0x96   :  { %v132_v6 = vld [vmem:[#allocation2] sm:$0xff] }
  0x97   :  { %v143_v8 = vmul.f32 0.5, %v132_v6 }
  0x99   :  { %39 = vperm.xlu1 %161, %v36_v17  }
 0x10c   :  { %v112_v19 = vpop.permute.xlu1 %111 }
 0x10d   :  { %v114_v20 = vsub.f32 %v75_v18, %v112_v19  ;;  %v130_v19 = vld [vmem:[%s263_s3] sm:$0xff] }
 0x10e   :  { %v84_v21 = vpop.permute.xlu0 %83 }
 0x10f   :  { %v115_v22 = vmul.f32 1.442695, %v114_v20  ;;  %v86_v23 = vsub.f32 %v74_v4, %v84_v21  ;;  %v131_v20 = vld [vmem:[%s264_s4] sm:$0xff] }
 0x110   :  { %v58_v24 = vpop.permute.xlu1 %57 }
 0x111   :  { %163 = vpow2.f32 %v115_v22  ;;  %v87_v25 = vmul.f32 1.442695, %v86_v23  ;;  %v60_v26 = vsub.f32 %v217_v0, %v58_v24 }
 0x113   :  { %165 = vpow2.f32 %v87_v25  ;;  %v61_v27 = vmul.f32 1.442695, %v60_v26 }
 0x114   :  { %v40_v35 = vpop.permute.xlu1 %39 }
 0x115   :  { %167 = vpow2.f32 %v61_v27  ;;  %vm41_vm2 = vcmp.eq.s32.totalorder %v35_v32, %v40_v35 }
 0x116   :  { %v42_v39 = vsel %vm41_vm2, %v217_v0, 0.0  ;;  %169 = vpow2.f32 %v119_v42 }
 0x117   :  { %v44_v40 = vsel %vm43_vm0, %v42_v39, 0.0  ;;  %171 = vpow2.f32 %v90_v43 }
 0x118   :  { %173 = vpow2.f32 %v65_v44 }
 0x11e   :  { %v164_v29 = vpop.eup %163 }
 0x11f   :  { %v122_v30 = vsel %vm43_vm0, %v164_v29, 0.0 }
 0x120   :  { %v166_v31 = vpop.eup %165  ;;  %123 = vadd.xlane.f32.xlu1 %v122_v30 }
 0x121   :  { %v94_v33 = vsel %vm43_vm0, %v166_v31, 0.0  ;;  %v101_v37 = vmul.f32 %v166_v31, %v75_v18 }
 0x122   :  { %v168_v34 = vpop.eup %167  ;;  %95 = vadd.xlane.f32.xlu0 %v94_v33 }
 0x123   :  { %v68_v36 = vsel %vm43_vm0, %v168_v34, 0.0  ;;  %v102_v38 = vsel %vm43_vm0, %v101_v37, 0.0  ;;  %v170_v45 = vpop.eup %169 }
 0x124   :  { %69 = vadd.xlane.f32.xlu1 %v68_v36  ;;  %v172_v47 = vpop.eup %171  ;;  %v121_v49 = vmul.f32 %v170_v45, %v117_v46 }
 0x125   :  { %v174_v50 = vpop.eup %173  ;;  %v93_v54 = vmul.f32 %v172_v47, %v92_v48  ;;  %v100_v61 = vmul.f32 %v172_v47, %v99_v59 }
 0x126   :  { %v67_v57 = vmul.f32 %v174_v50, %v63_v52 }
 0x128   :  { %103 = vadd.xlane.f32.xlu1 %v102_v38 }
 0x12c   :  { %45 = vadd.xlane.f32.xlu1 %v44_v40 }
 0x1a9   :  { %v124_v51 = vpop.xlane.xlu1 %123 }
 0x1aa   :  { %v125_v53 = vadd.f32 %v124_v51, %v121_v49 }
 0x1ab   :  { %v96_v55 = vpop.xlane.xlu0 %95 }
 0x1ac   :  { %126 = vst.msk [vmem:[#allocation8] sm:$0xff] %vm24_vm1, %v125_v53  ;;  %v97_v56 = vadd.f32 %v96_v55, %v93_v54 }
 0x1ad   :  { %v70_v58 = vpop.xlane.xlu1 %69 }
 0x1ae   :  { %98 = vst.msk [vmem:[#allocation6] sm:$0xff] %vm24_vm1, %v97_v56  ;;  %v71_v60 = vadd.f32 %v70_v58, %v67_v57 }
 0x1b0   :  { %72 = vst.msk [vmem:[#allocation3] sm:$0xff] %vm24_vm1, %v71_v60 }
 0x1b1   :  { %v104_v62 = vpop.xlane.xlu1 %103 }
 0x1b2   :  { %v105_v63 = vadd.f32 %v104_v62, %v100_v61 }
 0x1b3   :  { %v144_v0 = vld [vmem:[#allocation8] sm:$0xff] }
 0x1b4   :  { %175 = vlog2.f32 %v144_v0  ;;  %106 = vst.msk [vmem:[#allocation7] sm:$0xff] %vm24_vm1, %v105_v63 }
 0x1b5   :  { %v140_v2 = vld [vmem:[#allocation6] sm:$0xff]  ;;  %v46_v3 = vpop.xlane.xlu1 %45 }
 0x1b6   :  { %177 = vrcp.f32 %v140_v2  ;;  %v47_v4 = vadd.f32 %v46_v3, %v37_v1 }
 0x1b7   :  { %v133_v5 = vld [vmem:[#allocation3] sm:$0xff] }
 0x1b8   :  { %179 = vlog2.f32 %v133_v5  ;;  %49 = vst.msk [vmem:[#allocation4] sm:$0xff] %vm24_vm1, %v47_v4 }
 0x1bb   :  { %v139_v11 = vld [vmem:[#allocation7] sm:$0xff] }
 0x1bf   :  { %v137_v21 = vld [vmem:[#allocation4] sm:$0xff] }
 0x1c1   :  { %v176_v7 = vpop.eup %175 }
 0x1c2   :  { %v146_v9 = vmul.f32 0.6931472, %v176_v7 }
 0x1c3   :  { %v178_v10 = vpop.eup %177 }
 0x1c4   :  { %v147_v12 = vadd.f32 %v146_v9, %v143_v8  ;;  %v142_v13 = vmul.f32 %v178_v10, %v139_v11 }
 0x1c5   :  { %v180_v14 = vpop.eup %179 }
 0x1c6   :  { %v148_v15 = vsub.f32 %v147_v12, %v142_v13  ;;  %v135_v16 = vmul.f32 0.6931472, %v180_v14 }
 0x1c8   :  { %v149_v17 = vmul.f32 4.0, %v148_v15  ;;  %v136_v18 = vadd.f32 %v135_v16, %v132_v6 }
 0x1ca   :  { %v138_v22 = vsub.f32 %v136_v18, %v137_v21  ;;  %v151_v24 = vmul.f32 %v149_v17, %v131_v20 }
 0x1cc   :  { %v150_v23 = vmul.f32 %v138_v22, %v130_v19 }
 0x1ce   :  { %v152_v25 = vadd.f32 %v151_v24, %v150_v23 }
 0x1d0   :  { %153 = vst.msk [vmem:[%s265_s5] sm:$0xff] %vm24_vm1, %v152_v25 }

</bundles_post_ra>
